<compile_context>
chip_gen: v7x
topology: tpu7x:2x2x1
jax: 0.10.0
libtpu: 0.0.40
codegen_flags: <defaults>
</compile_context>

<pallas_src>
import jax
import jax.numpy as jnp
import numpy as np
from jax.experimental import pallas as pl
from jax.experimental.pallas import tpu as pltpu

LANE = 128      # lane width (last dim tiling)
SUBLANE = 8     # sublane width (second-to-last dim tiling)


def _round_up(x, m):
    return (x + m - 1) // m * m


def _cgrnn_kernel(x_ref, h_ref,
                  w1_ref, b1_ref,
                  w_rz_ref, w_in_ref, w_hn_ref,
                  b_rz_ref, b_in_ref, b_hn_ref,
                  out_ref):
    """Fused fc1 + ReLU + GRUCell for one batch tile.

    x_ref    : [TB, Fp]      input tile (compute dtype)
    h_ref    : [TB, Hp]      previous hidden tile (f32)
    w1_ref   : [Fp, Hp]      fc1 weight (transposed, padded)
    b1_ref   : [1, Hp]       fc1 bias (f32)
    w_rz_ref : [2Hp, 2Hp]    fused r|z weights; rows [0,Hp) act on xh, rows
                             [Hp,2Hp) act on h (both ih and hh folded in)
    w_in_ref : [Hp, Hp]      w_ih n-gate panel
    w_hn_ref : [Hp, Hp]      w_hh n-gate panel
    b_rz_ref : [1, 2Hp]      folded (b_ih + b_hh) for r,z gates (f32)
    b_in_ref : [1, Hp]       b_ih n gate (f32)
    b_hn_ref : [1, Hp]       b_hh n gate (f32) -- stays inside r * (.)
    out_ref  : [TB, Hp]      new hidden tile (f32)
    """
    Hp = out_ref.shape[-1]
    cdt = w1_ref.dtype

    h = h_ref[...]                                    # f32 recurrence carrier

    # fc1 + ReLU (MXU matmul, f32 accumulate).
    xh = jnp.dot(x_ref[...], w1_ref[...],
                 preferred_element_type=jnp.float32) + b1_ref[...]
    xh = jnp.maximum(xh, 0.0).astype(cdt)

    h_c = h.astype(cdt)

    # r,z gates: single K = 2*Hp contraction (fills the 256-deep MXU on
    # v6e/v7x, one result drain instead of two on v5e).
    xh_h = jnp.concatenate([xh, h_c], axis=-1)        # (TB, 2Hp)
    rz = jnp.dot(xh_h, w_rz_ref[...],
                 preferred_element_type=jnp.float32) + b_rz_ref[...]
    # sigmoid(x) == 0.5 * (tanh(x/2) + 1): one EUP transcendental.
    rz = 0.5 * (jnp.tanh(0.5 * rz) + 1.0)
    r = rz[:, :Hp]
    z = rz[:, Hp:]

    # n gate: b_hn must stay inside the r-gated term (PyTorch GRUCell).
    gh_n = jnp.dot(h_c, w_hn_ref[...],
                   preferred_element_type=jnp.float32) + b_hn_ref[...]
    gi_n = jnp.dot(xh, w_in_ref[...],
                   preferred_element_type=jnp.float32) + b_in_ref[...]
    n = jnp.tanh(gi_n + r * gh_n)

    out_ref[...] = (1.0 - z) * n + z * h


def prepare_params(params, compute_dtype=jnp.bfloat16):
    """One-time weight prep: transpose, per-gate lane padding, rz fusion, bias folding.

    params (PyTorch layout):
      w1   (H, F), b1 (H,)
      w_ih (3H, H), b_ih (3H,)   gate order r|z|n
      w_hh (3H, H), b_hh (3H,)

    Note: compute_dtype=bf16 also lowers the h-side matmuls to bf16; for
    bit-fidelity over very long recurrent rollouts use compute_dtype=f32.
    """
    H, F = params["w1"].shape
    Hp = _round_up(H, LANE)
    Fp = _round_up(F, LANE)

    def pad2(a, rows, cols):
        return jnp.pad(a, ((0, rows - a.shape[0]), (0, cols - a.shape[1])))

    def pad1(b, n):
        return jnp.pad(b, (0, n - b.shape[0]))

    # fc1: (H, F) -> (Fp, Hp)
    w1 = pad2(params["w1"].T, Fp, Hp).astype(compute_dtype)
    b1 = pad1(params["b1"], Hp).reshape(1, Hp).astype(jnp.float32)

    w_ih_t = params["w_ih"].T            # (H, 3H), columns r|z|n
    w_hh_t = params["w_hh"].T

    def gate(wt, g):                     # lane-aligned (Hp, Hp) gate panel
        return pad2(wt[:, g * H:(g + 1) * H], Hp, Hp)

    # Fused r,z weight: [[w_ih_r  w_ih_z],
    #                    [w_hh_r  w_hh_z]]  -> (2Hp, 2Hp)
    w_rz = jnp.concatenate([
        jnp.concatenate([gate(w_ih_t, 0), gate(w_ih_t, 1)], axis=1),
        jnp.concatenate([gate(w_hh_t, 0), gate(w_hh_t, 1)], axis=1),
    ], axis=0).astype(compute_dtype)

    w_in = gate(w_ih_t, 2).astype(compute_dtype)
    w_hn = gate(w_hh_t, 2).astype(compute_dtype)

    b_ih, b_hh = params["b_ih"], params["b_hh"]
    b_rz = jnp.concatenate([
        pad1(b_ih[:H] + b_hh[:H], Hp),                # r gate, folded
        pad1(b_ih[H:2 * H] + b_hh[H:2 * H], Hp),      # z gate, folded
    ]).reshape(1, 2 * Hp).astype(jnp.float32)
    b_in = pad1(b_ih[2 * H:], Hp).reshape(1, Hp).astype(jnp.float32)
    b_hn = pad1(b_hh[2 * H:], Hp).reshape(1, Hp).astype(jnp.float32)

    return dict(H=H, F=F, Hp=Hp, Fp=Fp, compute_dtype=compute_dtype,
                w1=w1, b1=b1, w_rz=w_rz, w_in=w_in, w_hn=w_hn,
                b_rz=b_rz, b_in=b_in, b_hn=b_hn)


def _select_batch_tiles(B, batch_tile):
    """Balanced batch tiling: pad waste stays < 8 rows/tile; bias to an even
    grid with >= 4 steps so v7x's 2 TensorCores both get >= 2 steps."""
    n_tiles = max(1, -(-B // batch_tile))
    if n_tiles < 4 and B >= 4 * SUBLANE:
        n_tiles = 4
    elif n_tiles > 1 and n_tiles % 2 == 1:
        n_tiles += 1
    TB = _round_up(-(-B // n_tiles), SUBLANE)
    return TB, n_tiles, TB * n_tiles


def _vmem_limit_bytes(TB, Fp, Hp, compute_dtype):
    """Scoped-VMEM budget: single-buffered weights + double-buffered activation
    tiles + f32 matmul temporaries, ~25% headroom, capped for v7x (64 MiB)."""
    wb = jnp.dtype(compute_dtype).itemsize
    weights = (Fp * Hp + 4 * Hp * Hp + 2 * Hp * Hp) * wb     # w1 + w_rz + w_in + w_hn
    biases = 5 * Hp * 4
    acts = 2 * TB * (Fp * wb + Hp * 4) + 2 * TB * Hp * 4     # x, h in; out
    temps = 4 * TB * 2 * Hp * 4                               # xh_h / rz / gi_n / gh_n
    total = int((weights + biases + acts + temps) * 1.25)
    return max(16 * 1024 * 1024, min(total, 64 * 1024 * 1024))


def cgrnn_agent_forward(inputs, hidden_state, prep, batch_tile=256):
    """Single GRU step.  inputs: (B, F); hidden_state: (..., H) -> reshaped (-1, H)."""
    H, F, Hp, Fp = prep["H"], prep["F"], prep["Hp"], prep["Fp"]
    cdt = prep["compute_dtype"]
    B = inputs.shape[0]
    h_in = hidden_state.reshape(-1, H)

    TB, n_tiles, Bp = _select_batch_tiles(B, batch_tile)

    # Zero padding is self-consistent: padded hidden columns stay exactly zero
    # through the cell.  Fresh buffers are always materialized so the in-place
    # alias below can never touch the caller's arrays.
    x = jnp.zeros((Bp, Fp), cdt)
    x = jax.lax.dynamic_update_slice(x, inputs.astype(cdt), (0, 0))
    h = jnp.zeros((Bp, Hp), jnp.float32)
    h = jax.lax.dynamic_update_slice(h, h_in.astype(jnp.float32), (0, 0))

    def act_spec(cols):                                # batch-tiled activations
        return pl.BlockSpec((TB, cols), lambda i: (i, 0))

    def resident(shape):                               # VMEM-resident, single buffer
        return pl.BlockSpec(shape, lambda i: (0, 0), pipeline_mode=pl.Buffered(1))

    out = pl.pallas_call(
        _cgrnn_kernel,
        out_shape=jax.ShapeDtypeStruct((Bp, Hp), jnp.float32),
        grid=(n_tiles,),
        in_specs=[
            act_spec(Fp),                              # x tile
            act_spec(Hp),                              # h tile
            resident((Fp, Hp)),                        # w1
            resident((1, Hp)),                         # b1
            resident((2 * Hp, 2 * Hp)),                # w_rz (fused r|z)
            resident((Hp, Hp)),                        # w_in
            resident((Hp, Hp)),                        # w_hn
            resident((1, 2 * Hp)),                     # b_rz
            resident((1, Hp)),                         # b_in
            resident((1, Hp)),                         # b_hn
        ],
        out_specs=act_spec(Hp),
        input_output_aliases={1: 0},                   # update padded h in place
        compiler_params=pltpu.CompilerParams(
            dimension_semantics=("parallel",),
            vmem_limit_bytes=_vmem_limit_bytes(TB, Fp, Hp, cdt)),
    )(x, h, prep["w1"], prep["b1"], prep["w_rz"], prep["w_in"], prep["w_hn"],
      prep["b_rz"], prep["b_in"], prep["b_hn"])

    return out[:B, :H]


def _reference_forward(inputs, hidden_state, params):
    """Pure-JAX reference replicating PyTorch CGRNNAgent.forward."""
    H = params["w1"].shape[0]
    x = jnp.maximum(inputs @ params["w1"].T + params["b1"], 0.0)
    h = hidden_state.reshape(-1, H)
    gi = x @ params["w_ih"].T + params["b_ih"]
    gh = h @ params["w_hh"].T + params["b_hh"]
    i_r, i_z, i_n = jnp.split(gi, 3, axis=-1)
    h_r, h_z, h_n = jnp.split(gh, 3, axis=-1)
    r = jax.nn.sigmoid(i_r + h_r)
    z = jax.nn.sigmoid(i_z + h_z)
    n = jnp.tanh(i_n + r * h_n)
    return (1.0 - z) * n + z * h


def init_params(key, input_shape, rnn_hidden_dim):
    ks = jax.random.split(key, 6)
    H, F = rnn_hidden_dim, input_shape
    s1 = 1.0 / np.sqrt(F)
    s2 = 1.0 / np.sqrt(H)
    return {
        "w1":   jax.random.uniform(ks[0], (H, F),      jnp.float32, -s1, s1),
        "b1":   jax.random.uniform(ks[1], (H,),        jnp.float32, -s1, s1),
        "w_ih": jax.random.uniform(ks[2], (3 * H, H),  jnp.float32, -s2, s2),
        "b_ih": jax.random.uniform(ks[3], (3 * H,),    jnp.float32, -s2, s2),
        "w_hh": jax.random.uniform(ks[4], (3 * H, H),  jnp.float32, -s2, s2),
        "b_hh": jax.random.uniform(ks[5], (3 * H,),    jnp.float32, -s2, s2),
    }


if __name__ == "__main__":
    key = jax.random.PRNGKey(0)

    # --- 1) Module-sized test (F=16, H=32, B=4). Functional check; at these
    #        sizes the padded kernel is overhead-dominated (see TODO at top).
    batch, input_shape, rnn_hidden_dim = 4, 16, 32
    k_p, k_x, k_h, k_big = jax.random.split(key, 4)
    params = init_params(k_p, input_shape, rnn_hidden_dim)
    inputs = jax.random.normal(k_x, (batch, input_shape), jnp.float32)
    # Usual pymarl call pattern: hidden arrives as (batch, 1, H).
    hidden_state = jax.random.normal(k_h, (batch, 1, rnn_hidden_dim), jnp.float32)
    h_ref = _reference_forward(inputs, hidden_state, params)

    prep_f32 = prepare_params(params, compute_dtype=jnp.float32)
    h_f32 = jax.block_until_ready(cgrnn_agent_forward(inputs, hidden_state, prep_f32))
    np.testing.assert_allclose(np.asarray(h_f32), np.asarray(h_ref),
                               rtol=1e-2, atol=1e-2)

    prep_bf16 = prepare_params(params, compute_dtype=jnp.bfloat16)
    h_bf16 = jax.block_until_ready(cgrnn_agent_forward(inputs, hidden_state, prep_bf16))
    np.testing.assert_allclose(np.asarray(h_bf16), np.asarray(h_ref),
                               rtol=5e-2, atol=5e-2)

    # --- 2) Lane-aligned test (F=96, H=128, B=200): exercises the fused rz
    #        K=2Hp dot, balanced batch tiling, and the even >=4-step grid.
    B2, F2, H2 = 200, 96, 128
    kp2, kx2, kh2 = jax.random.split(k_big, 3)
    params2 = init_params(kp2, F2, H2)
    inputs2 = jax.random.normal(kx2, (B2, F2), jnp.float32)
    hidden2 = jax.random.normal(kh2, (B2, 1, H2), jnp.float32)
    h_ref2 = _reference_forward(inputs2, hidden2, params2)

    prep2 = prepare_params(params2, compute_dtype=jnp.bfloat16)
    h2 = jax.block_until_ready(
        cgrnn_agent_forward(inputs2, hidden2, prep2, batch_tile=64))
    np.testing.assert_allclose(np.asarray(h2), np.asarray(h_ref2),
                               rtol=5e-2, atol=5e-2)

    print("KERNEL_OK")
</pallas_src>

<mosaic_0001>
module attributes {stable_mosaic.version = 11 : i64} {
  func.func @_cgrnn_kernel(%arg0: i32, %arg1: memref<8x128xf32, #tpu.memory_space<vmem>>, %arg2: memref<8x128xf32, #tpu.memory_space<vmem>>, %arg3: memref<128x128xf32, #tpu.memory_space<vmem>>, %arg4: memref<1x128xf32, #tpu.memory_space<vmem>>, %arg5: memref<256x256xf32, #tpu.memory_space<vmem>>, %arg6: memref<128x128xf32, #tpu.memory_space<vmem>>, %arg7: memref<128x128xf32, #tpu.memory_space<vmem>>, %arg8: memref<1x256xf32, #tpu.memory_space<vmem>>, %arg9: memref<1x128xf32, #tpu.memory_space<vmem>>, %arg10: memref<1x128xf32, #tpu.memory_space<vmem>>, %arg11: memref<8x128xf32, #tpu.memory_space<vmem>>) attributes {dimension_semantics = [#tpu.dimension_semantics<parallel>], iteration_bounds = array<i64: 1>, scalar_prefetch = 0 : i64, scratch_operands = 0 : i64, tpu.core_type = #tpu.core_type<tc>, window_params = [{transform_indices = @transform_0, window_bounds = array<i64: 8, 128>}, {transform_indices = @transform_1, window_bounds = array<i64: 8, 128>}, {pipeline_mode = #tpu.pipeline_mode<synchronous>, transform_indices = @transform_2, window_bounds = array<i64: 128, 128>}, {pipeline_mode = #tpu.pipeline_mode<synchronous>, transform_indices = @transform_3, window_bounds = array<i64: 1, 128>}, {pipeline_mode = #tpu.pipeline_mode<synchronous>, transform_indices = @transform_4, window_bounds = array<i64: 256, 256>}, {pipeline_mode = #tpu.pipeline_mode<synchronous>, transform_indices = @transform_5, window_bounds = array<i64: 128, 128>}, {pipeline_mode = #tpu.pipeline_mode<synchronous>, transform_indices = @transform_6, window_bounds = array<i64: 128, 128>}, {pipeline_mode = #tpu.pipeline_mode<synchronous>, transform_indices = @transform_7, window_bounds = array<i64: 1, 256>}, {pipeline_mode = #tpu.pipeline_mode<synchronous>, transform_indices = @transform_8, window_bounds = array<i64: 1, 128>}, {pipeline_mode = #tpu.pipeline_mode<synchronous>, transform_indices = @transform_9, window_bounds = array<i64: 1, 128>}, {transform_indices = @transform_10, window_bounds = array<i64: 8, 128>}]} {
    %c0 = arith.constant 0 : index
    %c0_0 = arith.constant 0 : index
    %0 = vector.load %arg2[%c0, %c0_0] : memref<8x128xf32, #tpu.memory_space<vmem>>, vector<8x128xf32>
    %c0_1 = arith.constant 0 : index
    %c0_2 = arith.constant 0 : index
    %1 = vector.load %arg1[%c0_1, %c0_2] : memref<8x128xf32, #tpu.memory_space<vmem>>, vector<8x128xf32>
    %c0_3 = arith.constant 0 : index
    %c0_4 = arith.constant 0 : index
    %2 = vector.load %arg3[%c0_3, %c0_4] : memref<128x128xf32, #tpu.memory_space<vmem>>, vector<128x128xf32>
    %cst = arith.constant dense<0.000000e+00> : vector<8x128xf32>
    %3 = tpu.matmul %1, %2, %cst {dimension_numbers = #tpu.dot_dimension_numbers<[1], [0], [0], [1], [0, 0, 1, 1], [], []>} : vector<8x128xf32>, vector<128x128xf32>, vector<8x128xf32> -> vector<8x128xf32>
    %c0_5 = arith.constant 0 : index
    %c0_6 = arith.constant 0 : index
    %4 = vector.load %arg4[%c0_5, %c0_6] : memref<1x128xf32, #tpu.memory_space<vmem>>, vector<1x128xf32>
    %5 = vector.broadcast %4 : vector<1x128xf32> to vector<8x128xf32>
    %6 = arith.addf %3, %5 : vector<8x128xf32>
    %cst_7 = arith.constant 0.000000e+00 : f32
    %7 = vector.broadcast %cst_7 : f32 to vector<8x128xf32>
    %8 = arith.maximumf %6, %7 : vector<8x128xf32>
    %9 = tpu.concatenate %8, %0 in 1 : vector<8x128xf32>, vector<8x128xf32> -> vector<8x256xf32>
    %c0_8 = arith.constant 0 : index
    %c0_9 = arith.constant 0 : index
    %10 = vector.load %arg5[%c0_8, %c0_9] : memref<256x256xf32, #tpu.memory_space<vmem>>, vector<256x256xf32>
    %cst_10 = arith.constant dense<0.000000e+00> : vector<8x256xf32>
    %11 = tpu.matmul %9, %10, %cst_10 {dimension_numbers = #tpu.dot_dimension_numbers<[1], [0], [0], [1], [0, 0, 1, 1], [], []>} : vector<8x256xf32>, vector<256x256xf32>, vector<8x256xf32> -> vector<8x256xf32>
    %c0_11 = arith.constant 0 : index
    %c0_12 = arith.constant 0 : index
    %12 = vector.load %arg8[%c0_11, %c0_12] : memref<1x256xf32, #tpu.memory_space<vmem>>, vector<1x256xf32>
    %13 = vector.broadcast %12 : vector<1x256xf32> to vector<8x256xf32>
    %14 = arith.addf %11, %13 : vector<8x256xf32>
    %cst_13 = arith.constant 5.000000e-01 : f32
    %15 = vector.broadcast %cst_13 : f32 to vector<8x256xf32>
    %16 = arith.mulf %15, %14 : vector<8x256xf32>
    %17 = math.tanh %16 : vector<8x256xf32>
    %cst_14 = arith.constant 1.000000e+00 : f32
    %18 = vector.broadcast %cst_14 : f32 to vector<8x256xf32>
    %19 = arith.addf %17, %18 : vector<8x256xf32>
    %cst_15 = arith.constant 5.000000e-01 : f32
    %20 = vector.broadcast %cst_15 : f32 to vector<8x256xf32>
    %21 = arith.mulf %20, %19 : vector<8x256xf32>
    %22 = vector.extract_strided_slice %21 {offsets = [0, 0], sizes = [8, 128], strides = [1, 1]} : vector<8x256xf32> to vector<8x128xf32>
    %23 = vector.extract_strided_slice %21 {offsets = [0, 128], sizes = [8, 128], strides = [1, 1]} : vector<8x256xf32> to vector<8x128xf32>
    %c0_16 = arith.constant 0 : index
    %c0_17 = arith.constant 0 : index
    %24 = vector.load %arg7[%c0_16, %c0_17] : memref<128x128xf32, #tpu.memory_space<vmem>>, vector<128x128xf32>
    %cst_18 = arith.constant dense<0.000000e+00> : vector<8x128xf32>
    %25 = tpu.matmul %0, %24, %cst_18 {dimension_numbers = #tpu.dot_dimension_numbers<[1], [0], [0], [1], [0, 0, 1, 1], [], []>} : vector<8x128xf32>, vector<128x128xf32>, vector<8x128xf32> -> vector<8x128xf32>
    %c0_19 = arith.constant 0 : index
    %c0_20 = arith.constant 0 : index
    %26 = vector.load %arg10[%c0_19, %c0_20] : memref<1x128xf32, #tpu.memory_space<vmem>>, vector<1x128xf32>
    %27 = vector.broadcast %26 : vector<1x128xf32> to vector<8x128xf32>
    %28 = arith.addf %25, %27 : vector<8x128xf32>
    %c0_21 = arith.constant 0 : index
    %c0_22 = arith.constant 0 : index
    %29 = vector.load %arg6[%c0_21, %c0_22] : memref<128x128xf32, #tpu.memory_space<vmem>>, vector<128x128xf32>
    %cst_23 = arith.constant dense<0.000000e+00> : vector<8x128xf32>
    %30 = tpu.matmul %8, %29, %cst_23 {dimension_numbers = #tpu.dot_dimension_numbers<[1], [0], [0], [1], [0, 0, 1, 1], [], []>} : vector<8x128xf32>, vector<128x128xf32>, vector<8x128xf32> -> vector<8x128xf32>
    %c0_24 = arith.constant 0 : index
    %c0_25 = arith.constant 0 : index
    %31 = vector.load %arg9[%c0_24, %c0_25] : memref<1x128xf32, #tpu.memory_space<vmem>>, vector<1x128xf32>
    %32 = vector.broadcast %31 : vector<1x128xf32> to vector<8x128xf32>
    %33 = arith.addf %30, %32 : vector<8x128xf32>
    %34 = arith.mulf %22, %28 : vector<8x128xf32>
    %35 = arith.addf %33, %34 : vector<8x128xf32>
    %36 = math.tanh %35 : vector<8x128xf32>
    %cst_26 = arith.constant 1.000000e+00 : f32
    %37 = vector.broadcast %cst_26 : f32 to vector<8x128xf32>
    %38 = arith.subf %37, %23 : vector<8x128xf32>
    %39 = arith.mulf %38, %36 : vector<8x128xf32>
    %40 = arith.mulf %23, %0 : vector<8x128xf32>
    %41 = arith.addf %39, %40 : vector<8x128xf32>
    %c0_27 = arith.constant 0 : index
    %c0_28 = arith.constant 0 : index
    %42 = vector.load %arg11[%c0_27, %c0_28] : memref<8x128xf32, #tpu.memory_space<vmem>>, vector<8x128xf32>
    tpu.vector_store %arg11[%c0_27, %c0_28], %41 {strides = array<i32>} : memref<8x128xf32, #tpu.memory_space<vmem>>, vector<8x128xf32>,
    return
  }
  func.func @transform_0(%arg0: i32) -> (i32, i32) {
    %c0_i32 = arith.constant 0 : i32
    %c0_i32_0 = arith.constant 0 : i32
    return %arg0, %c0_i32 : i32, i32
  }
  func.func @transform_1(%arg0: i32) -> (i32, i32) {
    %c0_i32 = arith.constant 0 : i32
    %c0_i32_0 = arith.constant 0 : i32
    return %arg0, %c0_i32 : i32, i32
  }
  func.func @transform_2(%arg0: i32) -> (i32, i32) {
    %c0_i32 = arith.constant 0 : i32
    %c0_i32_0 = arith.constant 0 : i32
    %c0_i32_1 = arith.constant 0 : i32
    return %c0_i32, %c0_i32_0 : i32, i32
  }
  func.func @transform_3(%arg0: i32) -> (i32, i32) {
    %c0_i32 = arith.constant 0 : i32
    %c0_i32_0 = arith.constant 0 : i32
    %c0_i32_1 = arith.constant 0 : i32
    return %c0_i32, %c0_i32_0 : i32, i32
  }
  func.func @transform_4(%arg0: i32) -> (i32, i32) {
    %c0_i32 = arith.constant 0 : i32
    %c0_i32_0 = arith.constant 0 : i32
    %c0_i32_1 = arith.constant 0 : i32
    return %c0_i32, %c0_i32_0 : i32, i32
  }
  func.func @transform_5(%arg0: i32) -> (i32, i32) {
    %c0_i32 = arith.constant 0 : i32
    %c0_i32_0 = arith.constant 0 : i32
    %c0_i32_1 = arith.constant 0 : i32
    return %c0_i32, %c0_i32_0 : i32, i32
  }
  func.func @transform_6(%arg0: i32) -> (i32, i32) {
    %c0_i32 = arith.constant 0 : i32
    %c0_i32_0 = arith.constant 0 : i32
    %c0_i32_1 = arith.constant 0 : i32
    return %c0_i32, %c0_i32_0 : i32, i32
  }
  func.func @transform_7(%arg0: i32) -> (i32, i32) {
    %c0_i32 = arith.constant 0 : i32
    %c0_i32_0 = arith.constant 0 : i32
    %c0_i32_1 = arith.constant 0 : i32
    return %c0_i32, %c0_i32_0 : i32, i32
  }
  func.func @transform_8(%arg0: i32) -> (i32, i32) {
    %c0_i32 = arith.constant 0 : i32
    %c0_i32_0 = arith.constant 0 : i32
    %c0_i32_1 = arith.constant 0 : i32
    return %c0_i32, %c0_i32_0 : i32, i32
  }
  func.func @transform_9(%arg0: i32) -> (i32, i32) {
    %c0_i32 = arith.constant 0 : i32
    %c0_i32_0 = arith.constant 0 : i32
    %c0_i32_1 = arith.constant 0 : i32
    return %c0_i32, %c0_i32_0 : i32, i32
  }
  func.func @transform_10(%arg0: i32) -> (i32, i32) {
    %c0_i32 = arith.constant 0 : i32
    %c0_i32_0 = arith.constant 0 : i32
    return %arg0, %c0_i32 : i32, i32
  }
}

</mosaic_0001>

<bundles_post_ra>
// kernel: tpu_custom_call.1
= control target key start
LH: loop header
LB: loop body
LE: loop exit
PB: predicated region body
PF: predicated region fallthrough
CT: control target
= control target key end

     0   :  { %15 = vsyncpa [#allocation3], 0  ;;  %s1217_s0 = inlined_call_operand.vmem [shape: f32[8,128], index: 0, kind: input, shape index: {}]   ;;  %s1218_s1 = inlined_call_operand.hbm [shape: f32[8,128], index: 1, kind: input, shape index: {}, may-alias: {1,10}]   ;;  %s1219_s2 = inlined_call_operand.hbm [shape: f32[128,128], index: 2, kind: input, shape index: {}]   ;;  %s1220_s3 = inlined_call_operand.vmem [shape: f32[1,128], index: 3, kind: input, shape index: {}]   ;;  %s1221_s4 = inlined_call_operand.hbm [shape: f32[256,256], index: 4, kind: input, shape index: {}]   ;;  %s1222_s5 = inlined_call_operand.hbm [shape: f32[128,128], index: 5, kind: input, shape index: {}]   ;;  %s1223_s6 = inlined_call_operand.hbm [shape: f32[128,128], index: 6, kind: input, shape index: {}]   ;;  %s1224_s7 = inlined_call_operand.vmem [shape: f32[1,256], index: 7, kind: input, shape index: {}]   ;;  %s1225_s8 = inlined_call_operand.vmem [shape: f32[1,128], index: 8, kind: input, shape index: {}]   ;;  %s1226_s9 = inlined_call_operand.vmem [shape: f32[1,128], index: 9, kind: input, shape index: {}]   ;;  %s1227_s10 = inlined_call_operand.hbm [shape: f32[8,128], index: 10, kind: output, shape index: {}, may-alias: {1,10}]  }
   0x1   :  { %16 = vsyncpa [#allocation6], 0 }
   0x2   :  { %17 = vsyncpa [#allocation9], 0 }
   0x3   :  { %18 = vsyncpa [#allocation4], 0  ;;  %s1018_s13 = smov [#allocation5]   ;;  %s878_s17 = scalar_lea.hbm %s1219_s2, 2048 }
   0x4   :  { %s36_s14 = sshll.u32 %s1018_s13, 4  ;;  %p879_p0 = scmp.ne.s32.totalorder %s1219_s2, %s878_s17  ;;  %s37_s14 = int_to_ptr.vmem [resolvable:$true] %s36_s14 }
   0x5   :  { %p882_p1 = scmp.lt.u32.totalorder %s878_s17, %s1219_s2 }
   0x7   :  { %p884_p2 = pnand %p882_p1, %p879_p0 }
   0x9   :  { %887 = shalt.err (!%p884_p2)
}
   0xa   :  { %s888_s22 = scalar_lea.vmem %s37_s14, 2048  ;;  %p893_p4 = scmp.lt.s32.totalorder %s37_s14, %s37_s14 }
   0xb   :  { %p889_p3 = scmp.ne.s32.totalorder %s37_s14, %s888_s22  ;;  %p894_p5 = scmp.lt.s32.totalorder %s888_s22, %s888_s22 }
   0xd   :  { %p895_p6 = por %p894_p5, %p893_p4 }
   0xf   :  { %p896_p7 = pnand %p895_p6, %p889_p3 }
  0x11   :  { %899 = shalt.err (!%p896_p7)
}
  0x12   :  { %s1019_s23 = smov 128   ;;  %s1020_s24 = smov 8  }
  0x13   :  { %42 = dma.hbm_to_vmem [thread:$0]  %s1219_s2, 2048, %s37_s14, [#allocation6], %s1019_s23, %s1019_s23, %s1020_s24  }
  0x14   :  { %s1021_s27 = smov [#allocation8]   ;;  %s1022_s29 = smov [#allocation2]  }
  0x15   :  { %s62_s28 = sshll.u32 %s1021_s27, 4  ;;  %s27_s30 = sshll.u32 %s1022_s29, 4  ;;  %s63_s28 = int_to_ptr.vmem [resolvable:$true] %s62_s28  ;;  %s28_s30 = int_to_ptr.vmem [resolvable:$true] %s27_s30 }
  0x16   :  { %s900_s13 = scalar_lea.hbm %s1222_s5, 2048 }
  0x17   :  { %p901_p8 = scmp.ne.s32.totalorder %s1222_s5, %s900_s13  ;;  %p904_p9 = scmp.lt.u32.totalorder %s900_s13, %s1222_s5 }
  0x19   :  { %p906_p10 = pnand %p904_p9, %p901_p8 }
  0x1b   :  { %909 = shalt.err (!%p906_p10)
}
  0x1c   :  { %s910_s2 = scalar_lea.vmem %s63_s28, 2048  ;;  %p915_p12 = scmp.lt.s32.totalorder %s63_s28, %s63_s28 }
  0x1d   :  { %p911_p11 = scmp.ne.s32.totalorder %s63_s28, %s910_s2  ;;  %p916_p13 = scmp.lt.s32.totalorder %s910_s2, %s910_s2 }
  0x1f   :  { %p917_p0 = por %p916_p13, %p915_p12 }
  0x21   :  { %p918_p1 = pnand %p917_p0, %p911_p11 }
  0x23   :  { %921 = shalt.err (!%p918_p1)
}
  0x24   :  { %68 = dma.hbm_to_vmem [thread:$0]  %s1222_s5, 2048, %s63_s28, [#allocation9], %s1019_s23, %s1019_s23, %s1020_s24  }
  0x25   :  { %s922_s22 = scalar_lea.hbm %s1218_s1, 128 }
  0x26   :  { %p923_p2 = scmp.ne.s32.totalorder %s1218_s1, %s922_s22  ;;  %p926_p3 = scmp.lt.u32.totalorder %s922_s22, %s1218_s1 }
  0x28   :  { %p928_p4 = pnand %p926_p3, %p923_p2 }
  0x2a   :  { %931 = shalt.err (!%p928_p4)
}
  0x2b   :  { %s932_s11 = scalar_lea.vmem %s28_s30, 128  ;;  %p937_p6 = scmp.lt.s32.totalorder %s28_s30, %s28_s30 }
  0x2c   :  { %p933_p5 = scmp.ne.s32.totalorder %s28_s30, %s932_s11  ;;  %p938_p7 = scmp.lt.s32.totalorder %s932_s11, %s932_s11 }
  0x2e   :  { %p939_p8 = por %p938_p7, %p937_p6 }
  0x30   :  { %p940_p9 = pnand %p939_p8, %p933_p5 }
  0x32   :  { %943 = shalt.err (!%p940_p9)
}
  0x33   :  { %30 = dma.hbm_to_vmem [thread:$0]  %s1218_s1, 128, %s28_s30, [#allocation3]  }
  0x34   :  { %s1023_s12 = smov [#allocation7]   ;;  %s944_s17 = scalar_lea.hbm %s1221_s4, 8192 }
  0x35   :  { %s50_s13 = sshll.u32 %s1023_s12, 4  ;;  %p945_p10 = scmp.ne.s32.totalorder %s1221_s4, %s944_s17  ;;  %s51_s13 = int_to_ptr.vmem [resolvable:$true] %s50_s13 }
  0x36   :  { %p948_p11 = scmp.lt.u32.totalorder %s944_s17, %s1221_s4 }
  0x38   :  { %p950_p12 = pnand %p948_p11, %p945_p10 }
  0x3a   :  { %953 = shalt.err (!%p950_p12)
}
  0x3b   :  { %s954_s20 = scalar_lea.vmem %s51_s13, 8192  ;;  %p959_p0 = scmp.lt.s32.totalorder %s51_s13, %s51_s13 }
  0x3c   :  { %p955_p13 = scmp.ne.s32.totalorder %s51_s13, %s954_s20  ;;  %p960_p1 = scmp.lt.s32.totalorder %s954_s20, %s954_s20 }
  0x3e   :  { %p961_p2 = por %p960_p1, %p959_p0 }
  0x40   :  { %p962_p3 = pnand %p961_p2, %p955_p13 }
  0x42   :  { %965 = shalt.err (!%p962_p3)
}
  0x43   :  { %s1024_s1 = smov 256   ;;  %s1025_s30 = smov 16  }
  0x44   :  { %56 = dma.hbm_to_vmem [thread:$0]  %s1221_s4, 8192, %s51_s13, [#allocation6], %s1024_s1, %s1024_s1, %s1025_s30  }
  0x45   :  { %s1026_s25 = smov [#allocation10]   ;;  %s966_s11 = scalar_lea.hbm %s1223_s6, 2048 }
  0x46   :  { %s74_s26 = sshll.u32 %s1026_s25, 4  ;;  %p967_p4 = scmp.ne.s32.totalorder %s1223_s6, %s966_s11  ;;  %s75_s26 = int_to_ptr.vmem [resolvable:$true] %s74_s26 }
  0x47   :  { %p970_p5 = scmp.lt.u32.totalorder %s966_s11, %s1223_s6 }
  0x49   :  { %p972_p6 = pnand %p970_p5, %p967_p4 }
  0x4b   :  { %975 = shalt.err (!%p972_p6)
}
  0x4c   :  { %s976_s16 = scalar_lea.vmem %s75_s26, 2048  ;;  %p981_p8 = scmp.lt.s32.totalorder %s75_s26, %s75_s26 }
  0x4d   :  { %p977_p7 = scmp.ne.s32.totalorder %s75_s26, %s976_s16  ;;  %p982_p9 = scmp.lt.s32.totalorder %s976_s16, %s976_s16 }
  0x4f   :  { %p983_p10 = por %p982_p9, %p981_p8 }
  0x51   :  { %p984_p11 = pnand %p983_p10, %p977_p7 }
  0x53   :  { %987 = shalt.err (!%p984_p11)
}
  0x54   :  { %80 = dma.hbm_to_vmem [thread:$0]  %s1223_s6, 2048, %s75_s26, [#allocation9], %s1019_s23, %s1019_s23, %s1020_s24  }
  0x55   :  { %1010 = dma.done.wait [#allocation3], 128  }
  0x56   :  { %1011 = vsyncadd [#allocation3], 4294967168 }
  0x57   :  { %1012 = dma.done.wait [#allocation6], 10240  }
  0x58   :  { %1013 = vsyncadd [#allocation6], 4294957056 }
  0x59   :  { %1014 = dma.done.wait [#allocation9], 4096  }
  0x5a   :  { %1015 = vsyncadd [#allocation9], 4294963200  ;;  %v1027_v0 = vmov 0.0|0.0   ;;  %vm1028_vm0 = vmmov 0   ;;  %v1029_v1 = vmov 0.0   ;;  %v104_v2 = vld [vmem:[#allocation5] sm:$0xff] }
  0x5b   :  { %723 = vmatprep.subr.bf16.mxu0 %v1027_v0  ;;  %650 = vmatprep.mubr.msk.f32.mxu0 %vm1028_vm0, %v1029_v1  ;;  %v105_v3 = vld [vmem:[#allocation5 + $0x8] sm:$0xff]  ;;  %v106_v4 = vld [vmem:[#allocation5 + $0x10] sm:$0xff]  ;;  %v107_v6 = vld [vmem:[#allocation5 + $0x18] sm:$0xff]  ;;  %s1030_s19 = smov [#allocation11]  }
  0x5c   :  { %v724_v5 = vpack.c.bf16 %v105_v3, %v104_v2  ;;  %v727_v7 = vpack.c.bf16 %v107_v6, %v106_v4  ;;  %v108_v8 = vld [vmem:[#allocation5 + $0x20] sm:$0xff]  ;;  %v109_v9 = vld [vmem:[#allocation5 + $0x28] sm:$0xff]  ;;  %v201_v11 = vld [vmem:[#allocation7 + $0x18] sm:$0xff]  ;;  %s553_s20 = sshll.u32 %s1030_s19, 4  ;;  %s554_s20 = int_to_ptr.vmem [resolvable:$true] %s553_s20 }
  0x5d   :  { %v199_v10 = vld [vmem:[#allocation7 + $0x8] sm:$0xff]  ;;  %v198_v12 = vld [vmem:[#allocation7] sm:$0xff]  ;;  %v200_v13 = vld [vmem:[#allocation7 + $0x10] sm:$0xff]  ;;  %v730_v14 = vpack.c.bf16 %v109_v9, %v108_v8  ;;  %p993_p13 = scmp.lt.s32.totalorder %s554_s20, %s554_s20 }
  0x5e   :  { %725 = vmatpush3.bf16.msra.mxu0 %v724_v5  ;;  %v110_v15 = vld [vmem:[#allocation5 + $0x30] sm:$0xff]  ;;  %v111_v16 = vld [vmem:[#allocation5 + $0x38] sm:$0xff]  ;;  %v747_v17 = vpack.c.bf16 %v201_v11, %v199_v10  ;;  %v749_v18 = vpack.c.bf16 %v200_v13, %v198_v12  ;;  %v203_v19 = vld [vmem:[#allocation7 + $0x28] sm:$0xff] }
  0x5f   :  { %726 = vmatprep.subr.bf16.mxu0 %v1027_v0  ;;  %v205_v20 = vld [vmem:[#allocation7 + $0x38] sm:$0xff]  ;;  %v202_v21 = vld [vmem:[#allocation7 + $0x20] sm:$0xff]  ;;  %v204_v22 = vld [vmem:[#allocation7 + $0x30] sm:$0xff]  ;;  %v733_v27 = vpack.c.bf16 %v111_v16, %v110_v15 }
  0x60   :  { %748 = vmatprep.subr.bf16.mxu1 %v747_v17  ;;  %v751_v23 = vpack.c.bf16 %v205_v20, %v203_v19  ;;  %v207_v24 = vld [vmem:[#allocation7 + $0x48] sm:$0xff]  ;;  %v753_v25 = vpack.c.bf16 %v204_v22, %v202_v21  ;;  %v209_v26 = vld [vmem:[#allocation7 + $0x58] sm:$0xff]  ;;  %v112_v28 = vld [vmem:[#allocation5 + $0x40] sm:$0xff] }
  0x61   :  { %750 = vmatpush1.bf16.msra.mxu1 %v749_v18  ;;  %v755_v29 = vpack.c.bf16 %v209_v26, %v207_v24  ;;  %v206_v30 = vld [vmem:[#allocation7 + $0x40] sm:$0xff]  ;;  %v208_v31 = vld [vmem:[#allocation7 + $0x50] sm:$0xff]  ;;  %v113_v32 = vld [vmem:[#allocation5 + $0x48] sm:$0xff] }
  0x62   :  { %728 = vmatpush3.bf16.msra.mxu0 %v727_v7  ;;  %752 = vmatprep.subr.bf16.mxu1 %v751_v23  ;;  %v211_v33 = vld [vmem:[#allocation7 + $0x68] sm:$0xff]  ;;  %v213_v34 = vld [vmem:[#allocation7 + $0x78] sm:$0xff]  ;;  %v757_v35 = vpack.c.bf16 %v208_v31, %v206_v30  ;;  %v736_v36 = vpack.c.bf16 %v113_v32, %v112_v28  ;;  %v114_v37 = vld [vmem:[#allocation5 + $0x50] sm:$0xff] }
  0x63   :  { %729 = vmatprep.subr.bf16.mxu0 %v1027_v0  ;;  %v759_v38 = vpack.c.bf16 %v213_v34, %v211_v33  ;;  %v210_v39 = vld [vmem:[#allocation7 + $0x60] sm:$0xff]  ;;  %v212_v40 = vld [vmem:[#allocation7 + $0x70] sm:$0xff]  ;;  %v115_v41 = vld [vmem:[#allocation5 + $0x58] sm:$0xff] }
  0x64   :  { %v215_v42 = vld [vmem:[#allocation7 + $0x88] sm:$0xff]  ;;  %v217_v43 = vld [vmem:[#allocation7 + $0x98] sm:$0xff]  ;;  %v761_v44 = vpack.c.bf16 %v212_v40, %v210_v39  ;;  %v739_v45 = vpack.c.bf16 %v115_v41, %v114_v37  ;;  %v116_v46 = vld [vmem:[#allocation5 + $0x60] sm:$0xff] }
  0x65   :  { %754 = vmatpush1.bf16.msra.mxu1 %v753_v25  ;;  %v763_v47 = vpack.c.bf16 %v217_v43, %v215_v42  ;;  %v214_v48 = vld [vmem:[#allocation7 + $0x80] sm:$0xff]  ;;  %v216_v49 = vld [vmem:[#allocation7 + $0x90] sm:$0xff]  ;;  %v117_v50 = vld [vmem:[#allocation5 + $0x68] sm:$0xff] }
  0x66   :  { %731 = vmatpush3.bf16.msra.mxu0 %v730_v14  ;;  %756 = vmatprep.subr.bf16.mxu1 %v755_v29  ;;  %v219_v51 = vld [vmem:[#allocation7 + $0xa8] sm:$0xff]  ;;  %v221_v52 = vld [vmem:[#allocation7 + $0xb8] sm:$0xff]  ;;  %v118_v53 = vld [vmem:[#allocation5 + $0x70] sm:$0xff]  ;;  %v765_v54 = vpack.c.bf16 %v216_v49, %v214_v48  ;;  %v742_v55 = vpack.c.bf16 %v117_v50, %v116_v46 }
  0x67   :  { %732 = vmatprep.subr.bf16.mxu0 %v1027_v0  ;;  %v767_v56 = vpack.c.bf16 %v221_v52, %v219_v51  ;;  %v218_v57 = vld [vmem:[#allocation7 + $0xa0] sm:$0xff]  ;;  %v220_v58 = vld [vmem:[#allocation7 + $0xb0] sm:$0xff]  ;;  %v1163_v59 = vld [vmem:[#allocation2] sm:$0xff] }
  0x68   :  { %v119_v60 = vld [vmem:[#allocation5 + $0x78] sm:$0xff]  ;;  %v223_v61 = vld [vmem:[#allocation7 + $0xc8] sm:$0xff]  ;;  %338 = vmatprep.mubr.f32.mxu1 %v1163_v59  ;;  %v769_v63 = vpack.c.bf16 %v220_v58, %v218_v57  ;;  %v353_v3 = vld [vmem:[#allocation10] sm:$0xff] }
  0x69   :  { %758 = vmatpush1.bf16.msra.mxu1 %v757_v35  ;;  %v225_v62 = vld [vmem:[#allocation7 + $0xd8] sm:$0xff]  ;;  %v745_v2 = vpack.c.bf16 %v119_v60, %v118_v53  ;;  %v222_v5 = vld [vmem:[#allocation7 + $0xc0] sm:$0xff]  ;;  %v224_v6 = vld [vmem:[#allocation7 + $0xd0] sm:$0xff] }
  0x6a   :  { %734 = vmatpush3.bf16.msra.mxu0 %v733_v27  ;;  %760 = vmatprep.subr.bf16.mxu1 %v759_v38  ;;  %v771_v4 = vpack.c.bf16 %v225_v62, %v223_v61  ;;  %v354_v7 = vld [vmem:[#allocation10 + $0x8] sm:$0xff]  ;;  %v229_v9 = vld [vmem:[#allocation7 + $0xf8] sm:$0xff]  ;;  %v773_v11 = vpack.c.bf16 %v224_v6, %v222_v5  ;;  %v355_v13 = vld [vmem:[#allocation10 + $0x10] sm:$0xff] }
  0x6b   :  { %735 = vmatprep.subr.bf16.mxu0 %v1027_v0  ;;  %v227_v8 = vld [vmem:[#allocation7 + $0xe8] sm:$0xff]  ;;  %v103_v10 = vld [vmem:[%s1217_s0] sm:$0xff]  ;;  %v812_v12 = vpack.c.bf16 %v354_v7, %v353_v3  ;;  %v226_v15 = vld [vmem:[#allocation7 + $0xe0] sm:$0xff] }
  0x6c   :  { %v775_v14 = vpack.c.bf16 %v229_v9, %v227_v8  ;;  %v228_v16 = vld [vmem:[#allocation7 + $0xf0] sm:$0xff]  ;;  %v356_v17 = vld [vmem:[#allocation10 + $0x18] sm:$0xff]  ;;  %v231_v18 = vld [vmem:[#allocation7 + $0x108] sm:$0xff] }
  0x6d   :  { %762 = vmatpush1.bf16.msra.mxu1 %v761_v44  ;;  %v233_v19 = vld [vmem:[#allocation7 + $0x118] sm:$0xff]  ;;  %v777_v20 = vpack.c.bf16 %v228_v16, %v226_v15  ;;  %v815_v21 = vpack.c.bf16 %v356_v17, %v355_v13  ;;  %v357_v22 = vld [vmem:[#allocation10 + $0x20] sm:$0xff]  ;;  %v232_v25 = vld [vmem:[#allocation7 + $0x110] sm:$0xff] }
  0x6e   :  { %737 = vmatpush3.bf16.msra.mxu0 %v736_v36  ;;  %764 = vmatprep.subr.bf16.mxu1 %v763_v47  ;;  %v779_v23 = vpack.c.bf16 %v233_v19, %v231_v18  ;;  %v230_v24 = vld [vmem:[#allocation7 + $0x100] sm:$0xff]  ;;  %v358_v26 = vld [vmem:[#allocation10 + $0x28] sm:$0xff]  ;;  %v237_v28 = vld [vmem:[#allocation7 + $0x138] sm:$0xff] }
  0x6f   :  { %738 = vmatprep.subr.bf16.mxu0 %v1027_v0  ;;  %v235_v27 = vld [vmem:[#allocation7 + $0x128] sm:$0xff]  ;;  %v781_v29 = vpack.c.bf16 %v232_v25, %v230_v24  ;;  %v818_v30 = vpack.c.bf16 %v358_v26, %v357_v22  ;;  %v359_v31 = vld [vmem:[#allocation10 + $0x30] sm:$0xff]  ;;  %v234_v33 = vld [vmem:[#allocation7 + $0x120] sm:$0xff] }
  0x70   :  { %v783_v32 = vpack.c.bf16 %v237_v28, %v235_v27  ;;  %v236_v34 = vld [vmem:[#allocation7 + $0x130] sm:$0xff]  ;;  %v360_v35 = vld [vmem:[#allocation10 + $0x38] sm:$0xff]  ;;  %v239_v36 = vld [vmem:[#allocation7 + $0x148] sm:$0xff] }
  0x71   :  { %766 = vmatpush1.bf16.msra.mxu1 %v765_v54  ;;  %v241_v37 = vld [vmem:[#allocation7 + $0x158] sm:$0xff]  ;;  %v785_v38 = vpack.c.bf16 %v236_v34, %v234_v33  ;;  %v821_v39 = vpack.c.bf16 %v360_v35, %v359_v31  ;;  %v361_v40 = vld [vmem:[#allocation10 + $0x40] sm:$0xff]  ;;  %v240_v43 = vld [vmem:[#allocation7 + $0x150] sm:$0xff] }
  0x72   :  { %740 = vmatpush3.bf16.msra.mxu0 %v739_v45  ;;  %768 = vmatprep.subr.bf16.mxu1 %v767_v56  ;;  %v787_v41 = vpack.c.bf16 %v241_v37, %v239_v36  ;;  %v238_v42 = vld [vmem:[#allocation7 + $0x140] sm:$0xff]  ;;  %v362_v44 = vld [vmem:[#allocation10 + $0x48] sm:$0xff]  ;;  %v245_v46 = vld [vmem:[#allocation7 + $0x178] sm:$0xff] }
  0x73   :  { %741 = vmatprep.subr.bf16.mxu0 %v1027_v0  ;;  %v243_v45 = vld [vmem:[#allocation7 + $0x168] sm:$0xff]  ;;  %v789_v47 = vpack.c.bf16 %v240_v43, %v238_v42  ;;  %v824_v48 = vpack.c.bf16 %v362_v44, %v361_v40  ;;  %v363_v49 = vld [vmem:[#allocation10 + $0x50] sm:$0xff]  ;;  %v242_v51 = vld [vmem:[#allocation7 + $0x160] sm:$0xff] }
  0x74   :  { %v791_v50 = vpack.c.bf16 %v245_v46, %v243_v45  ;;  %v244_v52 = vld [vmem:[#allocation7 + $0x170] sm:$0xff]  ;;  %v364_v53 = vld [vmem:[#allocation10 + $0x58] sm:$0xff]  ;;  %v247_v54 = vld [vmem:[#allocation7 + $0x188] sm:$0xff] }
  0x75   :  { %770 = vmatpush1.bf16.msra.mxu1 %v769_v63  ;;  %v793_v56 = vpack.c.bf16 %v244_v52, %v242_v51  ;;  %v827_v57 = vpack.c.bf16 %v364_v53, %v363_v49  ;;  %v365_v58 = vld [vmem:[#allocation10 + $0x60] sm:$0xff]  ;;  %v248_v62 = vld [vmem:[#allocation7 + $0x190] sm:$0xff]  ;;  %v366_v63 = vld [vmem:[#allocation10 + $0x68] sm:$0xff] }
  0x76   :  { %743 = vmatpush3.bf16.msra.mxu0 %v742_v55  ;;  %772 = vmatprep.subr.bf16.mxu1 %v771_v4  ;;  %v249_v55 = vld [vmem:[#allocation7 + $0x198] sm:$0xff]  ;;  %v246_v61 = vld [vmem:[#allocation7 + $0x180] sm:$0xff]  ;;  %v830_v5 = vpack.c.bf16 %v366_v63, %v365_v58  ;;  %v367_v6 = vld [vmem:[#allocation10 + $0x70] sm:$0xff] }
  0x77   :  { %744 = vmatprep.subr.bf16.mxu0 %v1027_v0  ;;  %v795_v60 = vpack.c.bf16 %v249_v55, %v247_v54  ;;  %v253_v3 = vld [vmem:[#allocation7 + $0x1b8] sm:$0xff]  ;;  %v797_v4 = vpack.c.bf16 %v248_v62, %v246_v61  ;;  %v250_v8 = vld [vmem:[#allocation7 + $0x1a0] sm:$0xff]  ;;  %v252_v9 = vld [vmem:[#allocation7 + $0x1b0] sm:$0xff]  ;;  %v264_v54 = vlaneseq }
  0x78   :  { %v801_v13 = vpack.c.bf16 %v252_v9, %v250_v8  ;;  %v254_v16 = vld [vmem:[#allocation7 + $0x1c0] sm:$0xff]  ;;  %v256_v17 = vld [vmem:[#allocation7 + $0x1d0] sm:$0xff]  ;;  %v447_v19 = vld [vmem:[#allocation8 + $0x8] sm:$0xff] }
  0x79   :  { %774 = vmatpush1.bf16.msra.mxu1 %v773_v11  ;;  %v255_v11 = vld [vmem:[#allocation7 + $0x1c8] sm:$0xff]  ;;  %v446_v18 = vld [vmem:[#allocation8] sm:$0xff]  ;;  %v448_v22 = vld [vmem:[#allocation8 + $0x10] sm:$0xff]  ;;  %v265_v55 = vshrl.u32 %v264_v54, 7 }
  0x7a   :  { %746 = vmatpush3.bf16.msra.mxu0 %v745_v2  ;;  %776 = vmatprep.subr.bf16.mxu1 %v775_v14  ;;  %v251_v2 = vld [vmem:[#allocation7 + $0x1a8] sm:$0xff]  ;;  %v450_v25 = vld [vmem:[#allocation8 + $0x20] sm:$0xff]  ;;  %v452_v28 = vld [vmem:[#allocation8 + $0x30] sm:$0xff] }
  0x7b   :  { %811 = vmatprep.subr.bf16.mxu0 %v1027_v0  ;;  %v799_v7 = vpack.c.bf16 %v253_v3, %v251_v2  ;;  %v451_v26 = vld [vmem:[#allocation8 + $0x28] sm:$0xff]  ;;  %v454_v31 = vld [vmem:[#allocation8 + $0x40] sm:$0xff]  ;;  %v457_v34 = vld [vmem:[#allocation8 + $0x58] sm:$0xff]  ;;  %v270_v58 = vsub.s32 1, %v265_v55 }
  0x7c   :  { %v842_v27 = vpack.c.bf16 %v451_v26, %v450_v25  ;;  %v458_v36 = vld [vmem:[#allocation8 + $0x60] sm:$0xff]  ;;  %v459_v37 = vld [vmem:[#allocation8 + $0x68] sm:$0xff]  ;;  %v261_v40 = vld [vmem:[#allocation7 + $0x1f8] sm:$0xff] }
  0x7d   :  { %651 = vmatmul.mubr.f32.vlgmr.msra.gmra.mrb[0].mxu0 %v103_v10  ;;  %778 = vmatpush1.bf16.msra.mxu1 %v777_v20  ;;  %v368_v10 = vld [vmem:[#allocation10 + $0x78] sm:$0xff]  ;;  %v805_v20 = vpack.c.bf16 %v256_v17, %v254_v16  ;;  %v258_v42 = vld [vmem:[#allocation7 + $0x1e0] sm:$0xff]  ;;  %v260_v43 = vld [vmem:[#allocation7 + $0x1f0] sm:$0xff] }
  0x7e   :  { %813 = vmatpush3.bf16.msra.mxu0 %v812_v12  ;;  %685 = vmatprep.mubr.msk.f32.mxu0 %vm1028_vm0, %v1029_v1  ;;  %v257_v12 = vld [vmem:[#allocation7 + $0x1d8] sm:$0xff]  ;;  %v833_v14 = vpack.c.bf16 %v368_v10, %v367_v6  ;;  %v460_v44 = vld [vmem:[#allocation8 + $0x70] sm:$0xff]  ;;  %v809_v45 = vpack.c.bf16 %v260_v43, %v258_v42 }
  0x7f   :  { %814 = vmatprep.subr.bf16.mxu0 %v1027_v0  ;;  %780 = vmatprep.subr.bf16.mxu1 %v779_v23  ;;  %v803_v15 = vpack.c.bf16 %v257_v12, %v255_v11  ;;  %v449_v23 = vld [vmem:[#allocation8 + $0x18] sm:$0xff] }
  0x80   :  { %v839_v24 = vpack.c.bf16 %v449_v23, %v448_v22  ;;  %v461_v46 = vld [vmem:[#allocation8 + $0x78] sm:$0xff] }
  0x81   :  { %782 = vmatpush1.bf16.msra.mxu1 %v781_v29  ;;  %v453_v29 = vld [vmem:[#allocation8 + $0x38] sm:$0xff] }
  0x82   :  { %816 = vmatpush3.bf16.msra.mxu0 %v815_v21  ;;  %784 = vmatprep.subr.bf16.mxu1 %v783_v32  ;;  %v836_v21 = vpack.c.bf16 %v447_v19, %v446_v18  ;;  %v455_v32 = vld [vmem:[#allocation8 + $0x48] sm:$0xff]  ;;  %v565_v9 = vld [vmem:[%s1226_s9] ss:$0 sm:$0xff] }
  0x83   :  { %817 = vmatprep.subr.bf16.mxu0 %v1027_v0  ;;  %v848_v33 = vpack.c.bf16 %v455_v32, %v454_v31  ;;  %v566_v11 = vld [vmem:[%s1225_s8] ss:$0 sm:$0xff]  ;;  %s988_s8 = scalar_lea.vmem %s554_s20, 128 }
  0x84   :  { %p989_p12 = scmp.ne.s32.totalorder %s554_s20, %s988_s8  ;;  %p994_p0 = scmp.lt.s32.totalorder %s988_s8, %s988_s8 }
  0x85   :  { %786 = vmatpush1.bf16.msra.mxu1 %v785_v38  ;;  %v854_v38 = vpack.c.bf16 %v459_v37, %v458_v36 }
  0x86   :  { %819 = vmatpush3.bf16.msra.mxu0 %v818_v30  ;;  %788 = vmatprep.subr.bf16.mxu1 %v787_v41  ;;  %v845_v30 = vpack.c.bf16 %v453_v29, %v452_v28  ;;  %p995_p1 = por %p994_p0, %p993_p13 }
  0x87   :  { %820 = vmatprep.subr.bf16.mxu0 %v1027_v0 }
  0x88   :  { %p996_p2 = pnand %p995_p1, %p989_p12 }
  0x89   :  { %790 = vmatpush1.bf16.msra.mxu1 %v789_v47  ;;  %v857_v47 = vpack.c.bf16 %v461_v46, %v460_v44 }
  0x8a   :  { %822 = vmatpush3.bf16.msra.mxu0 %v821_v39  ;;  %792 = vmatprep.subr.bf16.mxu1 %v791_v50  ;;  %v259_v39 = vld [vmem:[#allocation7 + $0x1e8] sm:$0xff] }
  0x8b   :  { %823 = vmatprep.subr.bf16.mxu0 %v1027_v0  ;;  %v807_v41 = vpack.c.bf16 %v261_v40, %v259_v39 }
  0x8d   :  { %794 = vmatpush1.bf16.msra.mxu1 %v793_v56  ;;  %v266_v56 = vsub.s32 0, %v265_v55 }
  0x8e   :  { %825 = vmatpush3.bf16.msra.mxu0 %v824_v48  ;;  %796 = vmatprep.subr.bf16.mxu1 %v795_v60  ;;  %v564_v48 = vld [vmem:[%s1220_s3] ss:$0 sm:$0xff] }
  0x8f   :  { %826 = vmatprep.subr.bf16.mxu0 %v1027_v0 }
  0x91   :  { %798 = vmatpush1.bf16.msra.mxu1 %v797_v4 }
  0x92   :  { %828 = vmatpush3.bf16.msra.mxu0 %v827_v57  ;;  %800 = vmatprep.subr.bf16.mxu1 %v799_v7  ;;  %v262_v57 = vld [vmem:[%s1224_s7] sm:$0x3] }
  0x93   :  { %829 = vmatprep.subr.bf16.mxu0 %v1027_v0  ;;  %v267_v60 = vrot.slane %v262_v57, %v266_v56  ;;  %v271_v63 = vrot.slane %v262_v57, %v270_v58 }
  0x95   :  { %802 = vmatpush1.bf16.msra.mxu1 %v801_v13 }
  0x96   :  { %831 = vmatpush3.bf16.msra.mxu0 %v830_v5  ;;  %804 = vmatprep.subr.bf16.mxu1 %v803_v15 }
  0x97   :  { %832 = vmatprep.subr.bf16.mxu0 %v1027_v0 }
  0x99   :  { %806 = vmatpush1.bf16.msra.mxu1 %v805_v20 }
  0x9a   :  { %834 = vmatpush3.bf16.msra.mxu0 %v833_v14  ;;  %808 = vmatprep.subr.bf16.mxu1 %v807_v41 }
  0x9b   :  { %835 = vmatprep.subr.bf16.mxu0 %v1027_v0 }
  0x9d   :  { %686 = vmatmul.mubr.f32.vlgmr.msra.gmra.mrb[2].mxu0 %v1163_v59  ;;  %810 = vmatpush1.bf16.msra.mxu1 %v809_v45 }
  0x9e   :  { %837 = vmatpush3.bf16.msra.mxu0 %v836_v21  ;;  %720 = vmatprep.mubr.msk.f32.mxu0 %vm1028_vm0, %v1029_v1  ;;  %v456_v1 = vld [vmem:[#allocation8 + $0x50] sm:$0xff] }
  0x9f   :  { %838 = vmatprep.subr.bf16.mxu0 %v1027_v0  ;;  %v851_v35 = vpack.c.bf16 %v457_v34, %v456_v1 }
  0xa2   :  { %840 = vmatpush3.bf16.msra.mxu0 %v839_v24 }
  0xa3   :  { %841 = vmatprep.subr.bf16.mxu0 %v1027_v0 }
  0xa6   :  { %843 = vmatpush3.bf16.msra.mxu0 %v842_v27 }
  0xa7   :  { %844 = vmatprep.subr.bf16.mxu0 %v1027_v0 }
  0xaa   :  { %846 = vmatpush3.bf16.msra.mxu0 %v845_v30 }
  0xab   :  { %847 = vmatprep.subr.bf16.mxu0 %v1027_v0 }
  0xae   :  { %849 = vmatpush3.bf16.msra.mxu0 %v848_v33 }
  0xaf   :  { %850 = vmatprep.subr.bf16.mxu0 %v1027_v0 }
  0xb2   :  { %852 = vmatpush3.bf16.msra.mxu0 %v851_v35 }
  0xb3   :  { %853 = vmatprep.subr.bf16.mxu0 %v1027_v0 }
  0xb6   :  { %855 = vmatpush3.bf16.msra.mxu0 %v854_v38 }
  0xb7   :  { %856 = vmatprep.subr.bf16.mxu0 %v1027_v0 }
  0xba   :  { %858 = vmatpush3.bf16.msra.mxu0 %v857_v47 }
 0x150   :  { %v193_v49 = vpop.f32.mrb[0].mxu0 }
 0x151   :  { %v194_v50 = vadd.f32 %v564_v48, %v193_v49  ;;  %v652_v51 = vpop.f32.mrb[1].mxu0 }
 0x153   :  { %v197_v0 = vmax.f32 %v194_v50, 0.0 }
 0x155   :  { %339 = vmatmul.mubr.f32.vlgmr.msra.gmra.mrb[0].mxu1 %v197_v0  ;;  %721 = vmatmul.mubr.f32.vlgmr.msra.gmra.mrb[4].mxu0 %v197_v0 }
 0x170   :  { %v442_v52 = vpop.f32.mrb[2].mxu0 }
 0x171   :  { %v687_v53 = vpop.f32.mrb[3].mxu0  ;;  %v443_v12 = vadd.f32 %v565_v9, %v442_v52 }
 0x228   :  { %v340_v61 = vpop.f32.mrb[0].mxu1  ;;  %v535_v62 = vpop.f32.mrb[4].mxu0 }
 0x229   :  { %v341_v2 = vadd.f32 %v340_v61, %v267_v60  ;;  %v342_v3 = vpop.f32.mrb[1].mxu1  ;;  %v722_v4 = vpop.f32.mrb[5].mxu0  ;;  %v536_v14 = vadd.f32 %v566_v11, %v535_v62 }
 0x22a   :  { %v343_v6 = vadd.f32 %v342_v3, %v271_v63 }
 0x22b   :  { %v345_v5 = vmul.f32 0.5, %v341_v2 }
 0x22c   :  { %v346_v7 = vmul.f32 0.5, %v343_v6 }
 0x22d   :  { %872 = vtanh.f32 %v345_v5 }
 0x22e   :  { %874 = vtanh.f32 %v346_v7 }
 0x237   :  { %v873_v8 = vpop.eup %872 }
 0x238   :  { %v349_v10 = vadd.f32 1.0, %v873_v8  ;;  %v875_v16 = vpop.eup %874 }
 0x239   :  { %v350_v18 = vadd.f32 1.0, %v875_v16 }
 0x23a   :  { %v351_v13 = vmul.f32 0.5, %v349_v10 }
 0x23b   :  { %v352_v19 = vmul.f32 0.5, %v350_v18 }
 0x23c   :  { %v539_v15 = vmul.f32 %v443_v12, %v351_v13 }
 0x23d   :  { %v542_v20 = vsub.f32 1.0, %v352_v19  ;;  %v544_v23 = vmul.f32 %v352_v19, %v1163_v59 }
 0x23e   :  { %v540_v17 = vadd.f32 %v539_v15, %v536_v14 }
 0x240   :  { %876 = vtanh.f32 %v540_v17 }
 0x24a   :  { %v877_v21 = vpop.eup %876 }
 0x24b   :  { %v543_v22 = vmul.f32 %v877_v21, %v542_v20 }
 0x24d   :  { %v545_v24 = vadd.f32 %v544_v23, %v543_v22 }
 0x24f   :  { %546 = vst [vmem:[#allocation11] sm:$0xff] %v545_v24 }
 0x250   :  { %999 = shalt.err (!%p996_p2)
}
 0x251   :  { %s1000_s30 = scalar_lea.hbm %s1227_s10, 128 }
 0x252   :  { %p1001_p3 = scmp.ne.s32.totalorder %s1227_s10, %s1000_s30  ;;  %p1004_p4 = scmp.lt.u32.totalorder %s1000_s30, %s1227_s10 }
 0x254   :  { %p1006_p5 = pnand %p1004_p4, %p1001_p3 }
 0x256   :  { %1009 = shalt.err (!%p1006_p5)
}
 0x257   :  { %556 = dma.vmem_to_hbm [thread:$0]  %s554_s20, 128, %s1227_s10, [#allocation4]  }
 0x258   :  { %1016 = dma.done.wait [#allocation4], 128  }
 0x259   :  { %1017 = vsyncadd [#allocation4], 4294967168 }
 0x25a   :  { %560 = vsyncpa [#allocation3], 1 }
 0x25b   :  { %561 = vsyncpa [#allocation6], 1 }
 0x25c   :  { %562 = vsyncpa [#allocation9], 1 }
 0x25d   :  { %563 = vsyncpa [#allocation4], 1 }

</bundles_post_ra>
